<compile_context>
chip_gen: v7x
topology: tpu7x:2x2x1
jax: 0.10.0
libtpu: 0.0.40
codegen_flags: <defaults>
</compile_context>

<pallas_src>
import functools

import jax
import jax.numpy as jnp
from jax.experimental import pallas as pl
from jax.experimental.pallas import tpu as pltpu


def _round_up(n, m):
    return ((n + m - 1) // m) * m


# --------------------------------------------------------------------------- #
# Kernels
# --------------------------------------------------------------------------- #
def _bn_stats_kernel(x_ref, w1_ref, gamma_ref, beta_ref, s_ref, t_ref,
                     *, eps, batch, batch_padded, tile_b, compute_dtype):
    """Pass 1: accumulate per-feature sum / sum-of-squares of h = x @ W1 across the
    batch grid, then finalize the folded BN scale (s) and shift (t) on the last tile.
    The two outputs are used as the resident accumulators (constant index_map)."""
    i = pl.program_id(0)

    @pl.when(i == 0)
    def _():
        s_ref[...] = jnp.zeros_like(s_ref)   # running sum(h)
        t_ref[...] = jnp.zeros_like(t_ref)   # running sum(h*h)

    # b1 omitted: it cancels exactly under training-mode BatchNorm.
    h = jnp.dot(x_ref[...].astype(compute_dtype),
                w1_ref[...].astype(compute_dtype),
                preferred_element_type=jnp.float32)          # [TB, Hp] f32

    if batch_padded != batch:
        # Zero the contribution of zero-padded batch rows so stats use the real batch.
        rows = i * tile_b + jax.lax.broadcasted_iota(jnp.int32, (tile_b, 1), 0)
        h = jnp.where(rows < batch, h, 0.0)

    s_ref[...] += jnp.sum(h, axis=0, keepdims=True)
    t_ref[...] += jnp.sum(h * h, axis=0, keepdims=True)

    @pl.when(i == pl.num_programs(0) - 1)
    def _():
        inv_b = jnp.float32(1.0 / batch)
        mean = s_ref[...] * inv_b
        var = jnp.maximum(t_ref[...] * inv_b - mean * mean, 0.0)   # biased var
        scale = gamma_ref[...] * jax.lax.rsqrt(var + eps)          # rsqrt -> EUP slot
        s_ref[...] = scale
        t_ref[...] = beta_ref[...] - mean * scale


def _mlp_apply_kernel(x_ref, w1_ref, s_ref, t_ref, w2_ref, b2_ref, o_ref,
                      *, compute_dtype):
    """Pass 2: y = relu((x @ W1) * s + t) @ W2 + b2 for one batch tile."""
    h = jnp.dot(x_ref[...].astype(compute_dtype),
                w1_ref[...].astype(compute_dtype),
                preferred_element_type=jnp.float32)
    a = jnp.maximum(h * s_ref[...] + t_ref[...], 0.0)
    y = jnp.dot(a.astype(compute_dtype),
                w2_ref[...].astype(compute_dtype),
                preferred_element_type=jnp.float32) + b2_ref[...]
    o_ref[...] = y.astype(o_ref.dtype)


# --------------------------------------------------------------------------- #
# Host-side glue
# --------------------------------------------------------------------------- #
def prepare_params(params, *, lane=128):
    """One-time prep: transpose Linear weights to [in,out] and zero-pad every feature
    dim to a multiple of 128 so the hot path never pays XLA transposes/copies or
    masked partial stores. Zero padding is exact (padded columns contribute nothing;
    padded hidden features get gamma=beta=0 -> activation 0 -> no output contribution)."""
    w1, w2 = params["w1"], params["w2"]
    hidden, in_features = w1.shape
    out_features = w2.shape[0]
    fin_p = _round_up(in_features, lane)
    hid_p = _round_up(hidden, lane)
    fout_p = _round_up(out_features, lane)

    f32 = jnp.float32
    w1_t = jnp.zeros((fin_p, hid_p), f32).at[:in_features, :hidden].set(w1.T)
    w2_t = jnp.zeros((hid_p, fout_p), f32).at[:hidden, :out_features].set(w2.T)
    b2 = jnp.zeros((1, fout_p), f32).at[0, :out_features].set(params["b2"])
    gamma = jnp.zeros((1, hid_p), f32).at[0, :hidden].set(params["gamma"])
    beta = jnp.zeros((1, hid_p), f32).at[0, :hidden].set(params["beta"])
    # NOTE: b1 is intentionally not prepared — it is a mathematical no-op under
    # training-mode BatchNorm (cancels in h - mean(h)).
    return {
        "w1": w1_t, "w2": w2_t, "b2": b2, "gamma": gamma, "beta": beta,
        "in_features": in_features, "hidden": hidden, "out_features": out_features,
    }


def mlp_forward(x, prep, *, eps=1e-5, compute_dtype=jnp.float32, tb=128):
    """x: [B, in_features] float32. prep: output of prepare_params.
    compute_dtype=jnp.bfloat16 enables the v6e/v7x fast MXU path (f32 accumulate)."""
    B, in_features = x.shape
    fin_p, hid_p = prep["w1"].shape
    fout_p = prep["w2"].shape[1]
    out_features = prep["out_features"]

    # Batch tiling: sublane-aligned tile, batch zero-padded to a whole number of tiles.
    TB = _round_up(min(tb, B), 8)
    n_tiles = pl.cdiv(B, TB)
    B_pad = n_tiles * TB

    x_p = jnp.zeros((B_pad, fin_p), x.dtype).at[:B, :in_features].set(x)

    w1, w2, b2 = prep["w1"], prep["w2"], prep["b2"]
    gamma, beta = prep["gamma"], prep["beta"]

    # ---- Pass 1: global BatchNorm statistics -> folded scale/shift (s, t) ---- #
    s, t = pl.pallas_call(
        functools.partial(_bn_stats_kernel, eps=eps, batch=B, batch_padded=B_pad,
                          tile_b=TB, compute_dtype=compute_dtype),
        out_shape=(jax.ShapeDtypeStruct((1, hid_p), jnp.float32),
                   jax.ShapeDtypeStruct((1, hid_p), jnp.float32)),
        grid_spec=pltpu.PrefetchScalarGridSpec(
            num_scalar_prefetch=0,
            grid=(n_tiles,),
            in_specs=[
                pl.BlockSpec((TB, fin_p), lambda i: (i, 0)),     # x tile (pipelined)
                pl.BlockSpec((fin_p, hid_p), lambda i: (0, 0)),  # W1 resident
                pl.BlockSpec((1, hid_p), lambda i: (0, 0)),      # gamma
                pl.BlockSpec((1, hid_p), lambda i: (0, 0)),      # beta
            ],
            out_specs=(pl.BlockSpec((1, hid_p), lambda i: (0, 0)),
                       pl.BlockSpec((1, hid_p), lambda i: (0, 0))),
        ),
        compiler_params=pltpu.CompilerParams(
            dimension_semantics=("arbitrary",)),                 # reduction axis
        cost_estimate=pl.CostEstimate(
            flops=2 * B_pad * fin_p * hid_p + 3 * B_pad * hid_p,
            transcendentals=hid_p,
            bytes_accessed=(B_pad * fin_p + fin_p * hid_p + 4 * hid_p) * 4),
    )(x_p, w1, gamma, beta)

    # ---- Pass 2: apply scale/shift + ReLU + second Linear (batch-parallel) ---- #
    y_p = pl.pallas_call(
        functools.partial(_mlp_apply_kernel, compute_dtype=compute_dtype),
        out_shape=jax.ShapeDtypeStruct((B_pad, fout_p), x.dtype),
        grid_spec=pltpu.PrefetchScalarGridSpec(
            num_scalar_prefetch=0,
            grid=(n_tiles,),
            in_specs=[
                pl.BlockSpec((TB, fin_p), lambda i: (i, 0)),     # x tile (pipelined)
                pl.BlockSpec((fin_p, hid_p), lambda i: (0, 0)),  # W1 resident
                pl.BlockSpec((1, hid_p), lambda i: (0, 0)),      # s
                pl.BlockSpec((1, hid_p), lambda i: (0, 0)),      # t
                pl.BlockSpec((hid_p, fout_p), lambda i: (0, 0)), # W2 resident
                pl.BlockSpec((1, fout_p), lambda i: (0, 0)),     # b2
            ],
            out_specs=pl.BlockSpec((TB, fout_p), lambda i: (i, 0)),
        ),
        compiler_params=pltpu.CompilerParams(
            dimension_semantics=("parallel",)),                  # megacore / v7x 2xTC
        cost_estimate=pl.CostEstimate(
            flops=2 * B_pad * hid_p * (fin_p + fout_p) + 4 * B_pad * hid_p,
            transcendentals=0,
            bytes_accessed=(B_pad * fin_p + fin_p * hid_p + hid_p * fout_p
                            + B_pad * fout_p + 2 * hid_p + fout_p) * 4),
    )(x_p, w1, s, t, w2, b2)

    return y_p[:B, :out_features]


# --------------------------------------------------------------------------- #
# Init + pure-JAX reference (PyTorch semantics, training-mode BatchNorm1d)
# --------------------------------------------------------------------------- #
def init_params(key, in_features, hidden_units, out_features):
    k1, k2, k3, k4 = jax.random.split(key, 4)
    bound1 = 1.0 / jnp.sqrt(in_features)
    bound2 = 1.0 / jnp.sqrt(hidden_units)
    return {
        "w1": jax.random.uniform(k1, (hidden_units, in_features), jnp.float32,
                                 -bound1, bound1),
        "b1": jax.random.uniform(k2, (hidden_units,), jnp.float32, -bound1, bound1),
        "w2": jax.random.uniform(k3, (out_features, hidden_units), jnp.float32,
                                 -bound2, bound2),
        "b2": jax.random.uniform(k4, (out_features,), jnp.float32, -bound2, bound2),
        "gamma": jnp.ones((hidden_units,), jnp.float32),
        "beta": jnp.zeros((hidden_units,), jnp.float32),
    }


def reference_forward(x, params, *, eps=1e-5):
    h = x @ params["w1"].T + params["b1"]
    mean = jnp.mean(h, axis=0, keepdims=True)
    var = jnp.mean((h - mean) ** 2, axis=0, keepdims=True)
    h = (h - mean) / jnp.sqrt(var + eps) * params["gamma"] + params["beta"]
    h = jnp.maximum(h, 0.0)
    return h @ params["w2"].T + params["b2"]


if __name__ == "__main__":
    in_features, hidden_units, out_features = 16, 32, 8
    batch = 8

    key = jax.random.PRNGKey(0)
    kx, kp = jax.random.split(key)
    x = jax.random.normal(kx, (batch, in_features), jnp.float32)
    params = init_params(kp, in_features, hidden_units, out_features)
    prep = prepare_params(params)

    y_ref = reference_forward(x, params)

    # f32 MXU path (exact check).
    y = jax.block_until_ready(mlp_forward(x, prep))
    assert y.shape == (batch, out_features)
    assert jnp.allclose(y, y_ref, atol=1e-3, rtol=1e-3), "f32 kernel mismatch vs reference"

    # bf16 MXU-input path (v6e/v7x fast path; f32 accumulate + f32 BN stats).
    y_bf16 = jax.block_until_ready(mlp_forward(x, prep, compute_dtype=jnp.bfloat16))
    assert jnp.allclose(y_bf16, y_ref, atol=8e-2, rtol=8e-2), "bf16 kernel mismatch vs reference"

    # TODO(synk): BatchNorm1d running_mean/running_var buffer updates (training-side
    # state) are not emitted; they do not affect the forward output.
    print("KERNEL_OK")
</pallas_src>

<mosaic_0001>
module attributes {stable_mosaic.version = 11 : i64} {
  func.func @_bn_stats_kernel(%arg0: i32, %arg1: memref<8x128xf32, #tpu.memory_space<vmem>>, %arg2: memref<128x128xf32, #tpu.memory_space<vmem>>, %arg3: memref<1x128xf32, #tpu.memory_space<vmem>>, %arg4: memref<1x128xf32, #tpu.memory_space<vmem>>, %arg5: memref<1x128xf32, #tpu.memory_space<vmem>>, %arg6: memref<1x128xf32, #tpu.memory_space<vmem>>) attributes {dimension_semantics = [#tpu.dimension_semantics<arbitrary>], iteration_bounds = array<i64: 1>, scalar_prefetch = 0 : i64, scratch_operands = 0 : i64, tpu.core_type = #tpu.core_type<tc>, window_params = [{transform_indices = @transform_0, window_bounds = array<i64: 8, 128>}, {pipeline_mode = #tpu.pipeline_mode<synchronous>, transform_indices = @transform_1, window_bounds = array<i64: 128, 128>}, {pipeline_mode = #tpu.pipeline_mode<synchronous>, transform_indices = @transform_2, window_bounds = array<i64: 1, 128>}, {pipeline_mode = #tpu.pipeline_mode<synchronous>, transform_indices = @transform_3, window_bounds = array<i64: 1, 128>}, {pipeline_mode = #tpu.pipeline_mode<synchronous>, transform_indices = @transform_4, window_bounds = array<i64: 1, 128>}, {pipeline_mode = #tpu.pipeline_mode<synchronous>, transform_indices = @transform_5, window_bounds = array<i64: 1, 128>}]} {
    %c0_i32 = arith.constant 0 : i32
    %0 = arith.cmpi eq, %arg0, %c0_i32 : i32
    %1 = arith.extui %0 : i1 to i32
    %c0_i32_0 = arith.constant 0 : i32
    %2 = arith.cmpi ne, %1, %c0_i32_0 : i32
    scf.if %2 {
      %cst_16 = arith.constant 0.000000e+00 : f32
      %20 = vector.broadcast %cst_16 : f32 to vector<1x128xf32>
      %c0_17 = arith.constant 0 : index
      %c0_18 = arith.constant 0 : index
      %21 = vector.load %arg5[%c0_17, %c0_18] : memref<1x128xf32, #tpu.memory_space<vmem>>, vector<1x128xf32>
      tpu.vector_store %arg5[%c0_17, %c0_18], %20 {strides = array<i32>} : memref<1x128xf32, #tpu.memory_space<vmem>>, vector<1x128xf32>,
      %cst_19 = arith.constant 0.000000e+00 : f32
      %22 = vector.broadcast %cst_19 : f32 to vector<1x128xf32>
      %c0_20 = arith.constant 0 : index
      %c0_21 = arith.constant 0 : index
      %23 = vector.load %arg6[%c0_20, %c0_21] : memref<1x128xf32, #tpu.memory_space<vmem>>, vector<1x128xf32>
      tpu.vector_store %arg6[%c0_20, %c0_21], %22 {strides = array<i32>} : memref<1x128xf32, #tpu.memory_space<vmem>>, vector<1x128xf32>,
    } else {
    }
    %c0 = arith.constant 0 : index
    %c0_1 = arith.constant 0 : index
    %3 = vector.load %arg1[%c0, %c0_1] : memref<8x128xf32, #tpu.memory_space<vmem>>, vector<8x128xf32>
    %c0_2 = arith.constant 0 : index
    %c0_3 = arith.constant 0 : index
    %4 = vector.load %arg2[%c0_2, %c0_3] : memref<128x128xf32, #tpu.memory_space<vmem>>, vector<128x128xf32>
    %cst = arith.constant dense<0.000000e+00> : vector<8x128xf32>
    %5 = tpu.matmul %3, %4, %cst {dimension_numbers = #tpu.dot_dimension_numbers<[1], [0], [0], [1], [0, 0, 1, 1], [], []>} : vector<8x128xf32>, vector<128x128xf32>, vector<8x128xf32> -> vector<8x128xf32>
    %c0_4 = arith.constant 0 : index
    %c0_5 = arith.constant 0 : index
    %6 = vector.load %arg5[%c0_4, %c0_5] : memref<1x128xf32, #tpu.memory_space<vmem>>, vector<1x128xf32>
    %cst_6 = arith.constant dense<0.000000e+00> : vector<128xf32>
    %7 = vector.multi_reduction <add>, %5, %cst_6 [0] : vector<8x128xf32> to vector<128xf32>
    %8 = vector.shape_cast %7 : vector<128xf32> to vector<1x128xf32>
    %9 = arith.addf %6, %8 : vector<1x128xf32>
    %c0_7 = arith.constant 0 : index
    %c0_8 = arith.constant 0 : index
    %10 = vector.load %arg5[%c0_7, %c0_8] : memref<1x128xf32, #tpu.memory_space<vmem>>, vector<1x128xf32>
    tpu.vector_store %arg5[%c0_7, %c0_8], %9 {strides = array<i32>} : memref<1x128xf32, #tpu.memory_space<vmem>>, vector<1x128xf32>,
    %c0_9 = arith.constant 0 : index
    %c0_10 = arith.constant 0 : index
    %11 = vector.load %arg6[%c0_9, %c0_10] : memref<1x128xf32, #tpu.memory_space<vmem>>, vector<1x128xf32>
    %12 = arith.mulf %5, %5 : vector<8x128xf32>
    %cst_11 = arith.constant dense<0.000000e+00> : vector<128xf32>
    %13 = vector.multi_reduction <add>, %12, %cst_11 [0] : vector<8x128xf32> to vector<128xf32>
    %14 = vector.shape_cast %13 : vector<128xf32> to vector<1x128xf32>
    %15 = arith.addf %11, %14 : vector<1x128xf32>
    %c0_12 = arith.constant 0 : index
    %c0_13 = arith.constant 0 : index
    %16 = vector.load %arg6[%c0_12, %c0_13] : memref<1x128xf32, #tpu.memory_space<vmem>>, vector<1x128xf32>
    tpu.vector_store %arg6[%c0_12, %c0_13], %15 {strides = array<i32>} : memref<1x128xf32, #tpu.memory_space<vmem>>, vector<1x128xf32>,
    %c0_i32_14 = arith.constant 0 : i32
    %17 = arith.cmpi eq, %arg0, %c0_i32_14 : i32
    %18 = arith.extui %17 : i1 to i32
    %c0_i32_15 = arith.constant 0 : i32
    %19 = arith.cmpi ne, %18, %c0_i32_15 : i32
    scf.if %19 {
      %c0_16 = arith.constant 0 : index
      %c0_17 = arith.constant 0 : index
      %20 = vector.load %arg5[%c0_16, %c0_17] : memref<1x128xf32, #tpu.memory_space<vmem>>, vector<1x128xf32>
      %cst_18 = arith.constant 1.250000e-01 : f32
      %21 = vector.broadcast %cst_18 : f32 to vector<1x128xf32>
      %22 = arith.mulf %20, %21 : vector<1x128xf32>
      %c0_19 = arith.constant 0 : index
      %c0_20 = arith.constant 0 : index
      %23 = vector.load %arg6[%c0_19, %c0_20] : memref<1x128xf32, #tpu.memory_space<vmem>>, vector<1x128xf32>
      %cst_21 = arith.constant 1.250000e-01 : f32
      %24 = vector.broadcast %cst_21 : f32 to vector<1x128xf32>
      %25 = arith.mulf %23, %24 : vector<1x128xf32>
      %26 = arith.mulf %22, %22 : vector<1x128xf32>
      %27 = arith.subf %25, %26 : vector<1x128xf32>
      %cst_22 = arith.constant 0.000000e+00 : f32
      %28 = vector.broadcast %cst_22 : f32 to vector<1x128xf32>
      %29 = arith.maximumf %27, %28 : vector<1x128xf32>
      %c0_23 = arith.constant 0 : index
      %c0_24 = arith.constant 0 : index
      %30 = vector.load %arg3[%c0_23, %c0_24] : memref<1x128xf32, #tpu.memory_space<vmem>>, vector<1x128xf32>
      %cst_25 = arith.constant 9.99999974E-6 : f32
      %31 = vector.broadcast %cst_25 : f32 to vector<1x128xf32>
      %32 = arith.addf %29, %31 : vector<1x128xf32>
      %33 = math.rsqrt %32 : vector<1x128xf32>
      %34 = arith.mulf %30, %33 : vector<1x128xf32>
      %c0_26 = arith.constant 0 : index
      %c0_27 = arith.constant 0 : index
      %35 = vector.load %arg5[%c0_26, %c0_27] : memref<1x128xf32, #tpu.memory_space<vmem>>, vector<1x128xf32>
      tpu.vector_store %arg5[%c0_26, %c0_27], %34 {strides = array<i32>} : memref<1x128xf32, #tpu.memory_space<vmem>>, vector<1x128xf32>,
      %c0_28 = arith.constant 0 : index
      %c0_29 = arith.constant 0 : index
      %36 = vector.load %arg4[%c0_28, %c0_29] : memref<1x128xf32, #tpu.memory_space<vmem>>, vector<1x128xf32>
      %37 = arith.mulf %22, %34 : vector<1x128xf32>
      %38 = arith.subf %36, %37 : vector<1x128xf32>
      %c0_30 = arith.constant 0 : index
      %c0_31 = arith.constant 0 : index
      %39 = vector.load %arg6[%c0_30, %c0_31] : memref<1x128xf32, #tpu.memory_space<vmem>>, vector<1x128xf32>
      tpu.vector_store %arg6[%c0_30, %c0_31], %38 {strides = array<i32>} : memref<1x128xf32, #tpu.memory_space<vmem>>, vector<1x128xf32>,
    } else {
    }
    return
  }
  func.func @transform_0(%arg0: i32) -> (i32, i32) {
    %c0_i32 = arith.constant 0 : i32
    %c0_i32_0 = arith.constant 0 : i32
    return %arg0, %c0_i32 : i32, i32
  }
  func.func @transform_1(%arg0: i32) -> (i32, i32) {
    %c0_i32 = arith.constant 0 : i32
    %c0_i32_0 = arith.constant 0 : i32
    %c0_i32_1 = arith.constant 0 : i32
    return %c0_i32, %c0_i32_0 : i32, i32
  }
  func.func @transform_2(%arg0: i32) -> (i32, i32) {
    %c0_i32 = arith.constant 0 : i32
    %c0_i32_0 = arith.constant 0 : i32
    %c0_i32_1 = arith.constant 0 : i32
    return %c0_i32, %c0_i32_0 : i32, i32
  }
  func.func @transform_3(%arg0: i32) -> (i32, i32) {
    %c0_i32 = arith.constant 0 : i32
    %c0_i32_0 = arith.constant 0 : i32
    %c0_i32_1 = arith.constant 0 : i32
    return %c0_i32, %c0_i32_0 : i32, i32
  }
  func.func @transform_4(%arg0: i32) -> (i32, i32) {
    %c0_i32 = arith.constant 0 : i32
    %c0_i32_0 = arith.constant 0 : i32
    %c0_i32_1 = arith.constant 0 : i32
    return %c0_i32, %c0_i32_0 : i32, i32
  }
  func.func @transform_5(%arg0: i32) -> (i32, i32) {
    %c0_i32 = arith.constant 0 : i32
    %c0_i32_0 = arith.constant 0 : i32
    %c0_i32_1 = arith.constant 0 : i32
    return %c0_i32, %c0_i32_0 : i32, i32
  }
}

</mosaic_0001>

<bundles_post_ra>
// kernel: tpu_custom_call.1
= control target key start
LH: loop header
LB: loop body
LE: loop exit
PB: predicated region body
PF: predicated region fallthrough
CT: control target
= control target key end

     0   :  { %11 = vsyncpa [#allocation3], 0  ;;  %s491_s0 = inlined_call_operand.hbm [shape: f32[8,128], index: 0, kind: input, shape index: {}]   ;;  %s492_s1 = inlined_call_operand.hbm [shape: f32[128,128], index: 1, kind: input, shape index: {}]   ;;  %s493_s2 = inlined_call_operand.vmem [shape: f32[1,128], index: 2, kind: input, shape index: {}]   ;;  %s494_s3 = inlined_call_operand.vmem [shape: f32[1,128], index: 3, kind: input, shape index: {}]   ;;  %s495_s4 = inlined_call_operand.hbm [shape: f32[1,128], index: 4, kind: output, shape index: {0}]   ;;  %s496_s5 = inlined_call_operand.hbm [shape: f32[1,128], index: 5, kind: output, shape index: {1}]  }
   0x1   :  { %12 = vsyncpa [#allocation6], 0 }
   0x2   :  { %13 = vsyncpa [#allocation4], 0 }
   0x3   :  { %14 = vsyncpa [#allocation9], 0  ;;  %s391_s18 = smov [#allocation2]   ;;  %s392_s20 = smov [#allocation5]  }
   0x4   :  { %s21_s19 = sshll.u32 %s391_s18, 4  ;;  %s30_s21 = sshll.u32 %s392_s20, 4  ;;  %s22_s19 = int_to_ptr.vmem [resolvable:$true] %s21_s19  ;;  %s430_s21 = int_to_ptr.vmem [resolvable:$true] %s30_s21 }
   0x5   :  { %s295_s24 = scalar_lea.hbm %s491_s0, 128 }
   0x6   :  { %p296_p0 = scmp.ne.s32.totalorder %s491_s0, %s295_s24  ;;  %p299_p1 = scmp.lt.u32.totalorder %s295_s24, %s491_s0 }
   0x8   :  { %p301_p2 = pnand %p299_p1, %p296_p0 }
   0xa   :  { %304 = shalt.err (!%p301_p2)
}
   0xb   :  { %s305_s29 = scalar_lea.vmem %s22_s19, 128  ;;  %p310_p4 = scmp.lt.s32.totalorder %s22_s19, %s22_s19 }
   0xc   :  { %p306_p3 = scmp.ne.s32.totalorder %s22_s19, %s305_s29  ;;  %p311_p5 = scmp.lt.s32.totalorder %s305_s29, %s305_s29 }
   0xe   :  { %p312_p6 = por %p311_p5, %p310_p4 }
  0x10   :  { %p313_p7 = pnand %p312_p6, %p306_p3 }
  0x12   :  { %316 = shalt.err (!%p313_p7)
}
  0x13   :  { %24 = dma.hbm_to_vmem [thread:$0]  %s491_s0, 128, %s22_s19, [#allocation3]  }
  0x14   :  { %s317_s9 = scalar_lea.hbm %s492_s1, 2048 }
  0x15   :  { %p318_p8 = scmp.ne.s32.totalorder %s492_s1, %s317_s9  ;;  %p321_p9 = scmp.lt.u32.totalorder %s317_s9, %s492_s1 }
  0x17   :  { %p323_p10 = pnand %p321_p9, %p318_p8 }
  0x19   :  { %326 = shalt.err (!%p323_p10)
}
  0x1a   :  { %s327_s14 = scalar_lea.vmem %s430_s21, 2048  ;;  %p332_p12 = scmp.lt.s32.totalorder %s430_s21, %s430_s21 }
  0x1b   :  { %p328_p11 = scmp.ne.s32.totalorder %s430_s21, %s327_s14  ;;  %p333_p13 = scmp.lt.s32.totalorder %s327_s14, %s327_s14 }
  0x1d   :  { %p334_p0 = por %p333_p13, %p332_p12 }
  0x1f   :  { %p335_p1 = pnand %p334_p0, %p328_p11 }
  0x21   :  { %338 = shalt.err (!%p335_p1)
}
  0x22   :  { %s393_s0 = smov 128   ;;  %s394_s15 = smov 8  }
  0x23   :  { %36 = dma.hbm_to_vmem [thread:$0]  %s492_s1, 2048, %s430_s21, [#allocation6], %s393_s0, %s393_s0, %s394_s15  }
  0x24   :  { %383 = dma.done.wait [#allocation3], 128  }
  0x25   :  { %384 = vsyncadd [#allocation3], 4294967168 }
  0x26   :  { %385 = dma.done.wait [#allocation6], 2048  }
  0x27   :  { %386 = vsyncadd [#allocation6], 4294965248  ;;  %v395_v0 = vmov 0.0|0.0   ;;  %v396_v1 = vmov 0.0   ;;  %vm397_vm0 = vmmov 0   ;;  %v54_v2 = vld [vmem:[#allocation5] sm:$0xff] }
  0x28   :  { %260 = vmatprep.subr.bf16.mxu0 %v395_v0  ;;  %51 = vst [vmem:[#allocation7] sm:$0x1] %v396_v1  ;;  %52 = vst [vmem:[#allocation8] sm:$0x1] %v396_v1  ;;  %257 = vmatprep.mubr.msk.f32.mxu0 %vm397_vm0, %v396_v1  ;;  %v55_v3 = vld [vmem:[#allocation5 + $0x8] sm:$0xff]  ;;  %v56_v4 = vld [vmem:[#allocation5 + $0x10] sm:$0xff] }
  0x29   :  { %v261_v5 = vpack.c.bf16 %v55_v3, %v54_v2  ;;  %v57_v6 = vld [vmem:[#allocation5 + $0x18] sm:$0xff]  ;;  %v58_v8 = vld [vmem:[#allocation5 + $0x20] sm:$0xff]  ;;  %v59_v9 = vld [vmem:[#allocation5 + $0x28] sm:$0xff]  ;;  %s398_s19 = smov [#allocation7]   ;;  %s399_s23 = smov [#allocation8]  }
  0x2a   :  { %v264_v7 = vpack.c.bf16 %v57_v6, %v56_v4  ;;  %v267_v10 = vpack.c.bf16 %v59_v9, %v58_v8  ;;  %v60_v11 = vld [vmem:[#allocation5 + $0x30] sm:$0xff]  ;;  %v61_v12 = vld [vmem:[#allocation5 + $0x38] sm:$0xff]  ;;  %v62_v14 = vld [vmem:[#allocation5 + $0x40] sm:$0xff]  ;;  %s184_s20 = sshll.u32 %s398_s19, 4  ;;  %s194_s24 = sshll.u32 %s399_s23, 4  ;;  %s185_s20 = int_to_ptr.vmem [resolvable:$true] %s184_s20  ;;  %s195_s24 = int_to_ptr.vmem [resolvable:$true] %s194_s24 }
  0x2b   :  { %262 = vmatpush3.bf16.msra.mxu0 %v261_v5  ;;  %v270_v13 = vpack.c.bf16 %v61_v12, %v60_v11  ;;  %v63_v15 = vld [vmem:[#allocation5 + $0x48] sm:$0xff]  ;;  %v64_v17 = vld [vmem:[#allocation5 + $0x50] sm:$0xff]  ;;  %v65_v18 = vld [vmem:[#allocation5 + $0x58] sm:$0xff]  ;;  %s339_s25 = scalar_lea.vmem %s185_s20, 16  ;;  %s343_s26 = scalar_lea.vmem %s185_s20, 32 }
  0x2c   :  { %263 = vmatprep.subr.bf16.mxu0 %v395_v0  ;;  %v273_v16 = vpack.c.bf16 %v63_v15, %v62_v14  ;;  %v276_v19 = vpack.c.bf16 %v65_v18, %v64_v17  ;;  %v66_v20 = vld [vmem:[#allocation5 + $0x60] sm:$0xff]  ;;  %v67_v21 = vld [vmem:[#allocation5 + $0x68] sm:$0xff]  ;;  %v68_v23 = vld [vmem:[#allocation5 + $0x70] sm:$0xff]  ;;  %p340_p2 = scmp.ne.s32.totalorder %s185_s20, %s339_s25  ;;  %p344_p3 = scmp.lt.s32.totalorder %s185_s20, %s185_s20 }
  0x2d   :  { %v279_v22 = vpack.c.bf16 %v67_v21, %v66_v20  ;;  %v69_v24 = vld [vmem:[#allocation5 + $0x78] sm:$0xff]  ;;  %p345_p4 = scmp.lt.s32.totalorder %s343_s26, %s339_s25 }
  0x2e   :  { %v282_v25 = vpack.c.bf16 %v69_v24, %v68_v23  ;;  %v53_v26 = vld [vmem:[#allocation2] sm:$0xff] }
  0x2f   :  { %265 = vmatpush3.bf16.msra.mxu0 %v264_v7  ;;  %v140_v39 = vld [vmem:[#allocation7] sm:$0x1]  ;;  %v149_v42 = vld [vmem:[#allocation8] sm:$0x1]  ;;  %v169_v54 = vld [vmem:[%s493_s2] sm:$0x1]  ;;  %p346_p5 = por %p345_p4, %p344_p3 }
  0x30   :  { %266 = vmatprep.subr.bf16.mxu0 %v395_v0  ;;  %v174_v57 = vld [vmem:[%s494_s3] sm:$0x1] }
  0x31   :  { %p347_p6 = pnand %p346_p5, %p340_p2 }
  0x33   :  { %268 = vmatpush3.bf16.msra.mxu0 %v267_v10 }
  0x34   :  { %269 = vmatprep.subr.bf16.mxu0 %v395_v0 }
  0x37   :  { %271 = vmatpush3.bf16.msra.mxu0 %v270_v13 }
  0x38   :  { %272 = vmatprep.subr.bf16.mxu0 %v395_v0 }
  0x3b   :  { %274 = vmatpush3.bf16.msra.mxu0 %v273_v16 }
  0x3c   :  { %275 = vmatprep.subr.bf16.mxu0 %v395_v0 }
  0x3f   :  { %277 = vmatpush3.bf16.msra.mxu0 %v276_v19 }
  0x40   :  { %278 = vmatprep.subr.bf16.mxu0 %v395_v0 }
  0x43   :  { %280 = vmatpush3.bf16.msra.mxu0 %v279_v22 }
  0x44   :  { %281 = vmatprep.subr.bf16.mxu0 %v395_v0 }
  0x47   :  { %283 = vmatpush3.bf16.msra.mxu0 %v282_v25 }
  0x4a   :  { %258 = vmatmul.mubr.f32.vlgmr.msra.gmra.mrb[0].mxu0 %v53_v26 }
 0x11d   :  { %v136_v27 = vpop.f32.mrb[0].mxu0 }
 0x11e   :  { %v141_v28 = vrot.slane %v136_v27, 4  ;;  %v150_v29 = vmul.f32 %v136_v27, %v136_v27  ;;  %v259_v30 = vpop.f32.mrb[1].mxu0 }
 0x120   :  { %v142_v31 = vadd.f32 %v141_v28, %v136_v27  ;;  %v151_v32 = vrot.slane %v150_v29, 4 }
 0x122   :  { %v143_v33 = vrot.slane %v142_v31, 2  ;;  %v152_v34 = vadd.f32 %v151_v32, %v150_v29 }
 0x124   :  { %v144_v35 = vadd.f32 %v143_v33, %v142_v31  ;;  %v153_v36 = vrot.slane %v152_v34, 2 }
 0x126   :  { %v145_v37 = vrot.slane %v144_v35, 1  ;;  %v154_v38 = vadd.f32 %v153_v36, %v152_v34 }
 0x128   :  { %v146_v40 = vadd.f32 %v145_v37, %v144_v35  ;;  %v155_v41 = vrot.slane %v154_v38, 1 }
 0x12a   :  { %v156_v43 = vadd.f32 %v155_v41, %v154_v38  ;;  %v147_v44 = vadd.f32 %v146_v40, %v140_v39 }
 0x12c   :  { %v157_v45 = vadd.f32 %v156_v43, %v149_v42  ;;  %148 = vst [vmem:[#allocation7] sm:$0x1] %v147_v44 }
 0x12e   :  { %158 = vst [vmem:[#allocation8] sm:$0x1] %v157_v45 }
 0x133   :  { %v162_v46 = vld [vmem:[#allocation7] sm:$0x1] }
 0x134   :  { %v163_v47 = vmul.f32 0.125, %v162_v46 }
 0x135   :  { %v164_v48 = vld [vmem:[#allocation8] sm:$0x1] }
 0x136   :  { %v165_v49 = vmul.f32 0.125, %v164_v48  ;;  %v166_v50 = vmul.f32 %v163_v47, %v163_v47 }
 0x138   :  { %v167_v51 = vsub.f32 %v165_v49, %v166_v50 }
 0x13a   :  { %v168_v52 = vmax.f32 %v167_v51, 0.0 }
 0x13c   :  { %v170_v53 = vadd.f32 1e-05, %v168_v52 }
 0x13e   :  { %293 = vrsqrt.f32 %v170_v53 }
 0x148   :  { %v294_v55 = vpop.eup %293 }
 0x149   :  { %v172_v56 = vmul.f32 %v294_v55, %v169_v54 }
 0x14b   :  { %173 = vst [vmem:[#allocation7] sm:$0x1] %v172_v56  ;;  %v175_v58 = vmul.f32 %v172_v56, %v163_v47 }
 0x14c   :  { %350 = shalt.err (!%p347_p6)
}
 0x14d   :  { %s351_s28 = scalar_lea.hbm %s495_s4, 16 }
 0x14e   :  { %p352_p7 = scmp.ne.s32.totalorder %s495_s4, %s351_s28  ;;  %p355_p8 = scmp.lt.u32.totalorder %s351_s28, %s495_s4 }
 0x150   :  { %p357_p9 = pnand %p355_p8, %p352_p7 }
 0x152   :  { %360 = shalt.err (!%p357_p9)
}
 0x153   :  { %187 = dma.vmem_to_hbm [thread:$0]  %s185_s20, 16, %s495_s4, [#allocation4]   ;;  %v176_v59 = vsub.f32 %v174_v57, %v175_v58 }
 0x154   :  { %s361_s9 = scalar_lea.vmem %s195_s24, 16  ;;  %s365_s10 = scalar_lea.vmem %s195_s24, 32 }
 0x155   :  { %177 = vst [vmem:[#allocation8] sm:$0x1] %v176_v59  ;;  %p362_p10 = scmp.ne.s32.totalorder %s195_s24, %s361_s9  ;;  %p366_p11 = scmp.lt.s32.totalorder %s195_s24, %s195_s24 }
 0x156   :  { %p367_p12 = scmp.lt.s32.totalorder %s365_s10, %s361_s9 }
 0x158   :  { %p368_p13 = por %p367_p12, %p366_p11 }
 0x15a   :  { %p369_p0 = pnand %p368_p13, %p362_p10 }
 0x15c   :  { %372 = shalt.err (!%p369_p0)
}
 0x15d   :  { %s373_s13 = scalar_lea.hbm %s496_s5, 16 }
 0x15e   :  { %p374_p1 = scmp.ne.s32.totalorder %s496_s5, %s373_s13  ;;  %p377_p2 = scmp.lt.u32.totalorder %s373_s13, %s496_s5 }
 0x160   :  { %p379_p3 = pnand %p377_p2, %p374_p1 }
 0x162   :  { %382 = shalt.err (!%p379_p3)
}
 0x163   :  { %197 = dma.vmem_to_hbm [thread:$0]  %s195_s24, 16, %s496_s5, [#allocation9]  }
 0x164   :  { %387 = dma.done.wait [#allocation4], 16  }
 0x165   :  { %388 = vsyncadd [#allocation4], 4294967280 }
 0x166   :  { %389 = dma.done.wait [#allocation9], 16  }
 0x167   :  { %390 = vsyncadd [#allocation9], 4294967280 }
 0x168   :  { %204 = vsyncpa [#allocation3], 1 }
 0x169   :  { %205 = vsyncpa [#allocation6], 1 }
 0x16a   :  { %206 = vsyncpa [#allocation4], 1 }
 0x16b   :  { %207 = vsyncpa [#allocation9], 1 }

</bundles_post_ra>
